<compile_context>
chip_gen: v5e
topology: v5e:2x2
jax: 0.10.0
libtpu: 0.0.40
codegen_flags: <defaults>
</compile_context>

<pallas_src>
import functools

import jax
import jax.numpy as jnp
import numpy as np
from jax.experimental import pallas as pl
from jax.experimental.pallas import tpu as pltpu

EPS = 1e-5


# ----------------------------- kernel -------------------------------------- #

def _conv_bn_stats_kernel(x_ref, w_ref, mask_ref, y_ref, stats_ref, *, Wp, L, inv_cnt):
    """Per-tile 3x3 conv as 9 accumulated MXU matmuls + BN partial stats.

    x_ref    : (Cin, (th+3)*Wp)  flattened, zero-padded input rows (+1 top / +2 bottom halo)
    w_ref    : (9, Cout, Cin)    tap weights (VMEM-resident)
    mask_ref : (1, L)            1.0 on valid columns, 0.0 on the 2 garbage columns per row
    y_ref    : (Cout, L)         conv output, channel-major, lane-dense
    stats_ref: (Cout, 2)         per-tile [sum, centred M2] over valid elements
    """
    x = x_ref[...]                                                   # (Cin, Ls)
    acc = jnp.dot(w_ref[0], x[:, 0:L], preferred_element_type=jnp.float32)
    for t in range(1, 9):                                            # unrolled taps
        kh, kw = divmod(t, 3)
        off = kh * Wp + kw                                           # static lane offset
        acc = acc + jnp.dot(w_ref[t], x[:, off:off + L],
                            preferred_element_type=jnp.float32)
    y_ref[...] = acc                                                 # full-lane stores

    m = mask_ref[...]                                                # (1, L)
    s = jnp.sum(acc * m, axis=1, keepdims=True)                      # (Cout, 1)
    mu = s * inv_cnt                                                 # per-tile mean
    d = (acc - mu) * m
    m2 = jnp.sum(d * d, axis=1, keepdims=True)                       # centred 2nd moment
    stats_ref[:, 0:1] = s
    stats_ref[:, 1:2] = m2


# ----------------------------- tiling helpers ------------------------------ #

def _vmem_capacity_bytes():
    try:
        return int(pltpu.get_tpu_info().vmem_capacity_bytes)
    except Exception:
        return 64 * 1024 * 1024        # conservative fallback (v7x-sized)


def _choose_tile_h(N, H, W, Cin, Cout, budget_bytes):
    """Largest th | H whose double-buffered in+out blocks fit `budget_bytes`."""
    Wp = W + 2

    def step_bytes(th):
        in_b = max(Cin, 8) * (th + 3) * Wp * 4
        out_b = max(Cout, 8) * th * Wp * 4
        return 2 * (in_b + out_b)                     # double-buffered input + output

    divs = [d for d in range(1, H + 1) if H % d == 0]
    fit = [d for d in divs if step_bytes(d) <= budget_bytes] or [1]
    th = max(fit)
    if N * (H // th) < 2:                             # keep >= 2 grid steps for v7x's 2 TCs
        multi = [d for d in fit if H // d >= 2]
        if multi:
            th = max(multi)
    return th


# ----------------------------- wrapper -------------------------------------- #

def simple_block2d(x, weight, bias, gamma, beta, *, tile_h=None):
    """x: (N, Cin, H, W) f32 -> (N, Cout, H, W) f32 (PyTorch NCHW semantics).

    `bias` is accepted for API parity but unused: training-mode BatchNorm cancels a
    per-channel conv bias exactly.
    """
    del bias
    N, Cin, H, W = x.shape
    Cout = weight.shape[0]
    Wp, Hp = W + 2, H + 3

    vmem_cap = _vmem_capacity_bytes()
    th = tile_h if tile_h is not None else _choose_tile_h(N, H, W, Cin, Cout, vmem_cap // 4)
    assert H % th == 0, "tile_h must divide H"
    nH = H // th
    T = N * nH                     # grid size (row-band tiles)
    L = th * Wp                    # GEMM lanes per tile (incl. 2 garbage cols per row)
    Ls = (th + 3) * Wp             # input slab lanes per tile (+1 top / +2 bottom halo rows)

    # ---- minimal XLA glue: one spatial pad, free reshape, (optional) halo slabs ----
    xf = x.astype(jnp.float32)
    x_pad = jnp.pad(xf, ((0, 0), (0, 0), (1, 2), (1, 1)))            # (N, Cin, Hp, Wp)
    x_flat = x_pad.reshape(N, Cin, Hp * Wp)
    if nH == 1:
        slabs = x_flat                                               # whole image per step
    else:
        slabs = jnp.stack(
            [x_flat[:, :, b * th * Wp: b * th * Wp + Ls] for b in range(nH)],
            axis=1).reshape(T, Cin, Ls)                              # 3-row halo duplication only

    w_taps = jnp.transpose(weight.astype(jnp.float32), (2, 3, 0, 1)).reshape(9, Cout, Cin)
    mask = jnp.asarray((np.arange(L) % Wp < W).astype(np.float32).reshape(1, L))

    kernel = functools.partial(_conv_bn_stats_kernel, Wp=Wp, L=L,
                               inv_cnt=1.0 / float(th * W))

    y_wide, stats = pl.pallas_call(
        kernel,
        out_shape=(jax.ShapeDtypeStruct((T, Cout, L), jnp.float32),
                   jax.ShapeDtypeStruct((T, Cout, 2), jnp.float32)),
        grid_spec=pltpu.PrefetchScalarGridSpec(
            num_scalar_prefetch=0,
            grid=(T,),
            in_specs=[
                pl.BlockSpec((None, Cin, Ls), lambda t: (t, 0, 0)),   # per-tile input slab
                pl.BlockSpec((9, Cout, Cin), lambda t: (0, 0, 0)),    # tap weights, resident
                pl.BlockSpec((1, L), lambda t: (0, 0)),               # valid-column mask, resident
            ],
            out_specs=[
                pl.BlockSpec((None, Cout, L), lambda t: (t, 0, 0)),   # conv out, channel-major
                pl.BlockSpec((None, Cout, 2), lambda t: (t, 0, 0)),   # per-tile (sum, M2)
            ],
        ),
        compiler_params=pltpu.CompilerParams(
            dimension_semantics=("parallel",),
            vmem_limit_bytes=int(vmem_cap // 2)),
    )(slabs, w_taps, mask)

    # ---- Welford-style merge of per-tile partials -> per-channel scale/shift ----
    cnt = float(th * W)
    m_tot = cnt * T
    sum_t, m2_t = stats[:, :, 0], stats[:, :, 1]                     # (T, Cout)
    mean = jnp.sum(sum_t, axis=0) / m_tot
    mean_t = sum_t / cnt
    var = (jnp.sum(m2_t, axis=0) + cnt * jnp.sum((mean_t - mean) ** 2, axis=0)) / m_tot
    inv = gamma.astype(jnp.float32) * jax.lax.rsqrt(var + EPS)
    shift = beta.astype(jnp.float32) - mean * inv

    # ---- fused XLA epilogue: band re-interleave + width slice + BN affine + ReLU ----
    y = y_wide.reshape(N, nH, Cout, th, Wp)
    y = jnp.transpose(y, (0, 2, 1, 3, 4)).reshape(N, Cout, H, Wp)[:, :, :, :W]
    return jnp.maximum(y * inv.reshape(1, Cout, 1, 1) + shift.reshape(1, Cout, 1, 1), 0.0)


# ----------------------------- reference & test ----------------------------- #

def _reference(x, weight, bias, gamma, beta):
    out = jax.lax.conv_general_dilated(
        x, weight, window_strides=(1, 1), padding=((1, 1), (1, 1)),
        dimension_numbers=("NCHW", "OIHW", "NCHW"))
    out = out + bias.reshape(1, -1, 1, 1)
    mean = out.mean(axis=(0, 2, 3), keepdims=True)
    var = ((out - mean) ** 2).mean(axis=(0, 2, 3), keepdims=True)
    out = (out - mean) * jax.lax.rsqrt(var + EPS)
    out = out * gamma.reshape(1, -1, 1, 1) + beta.reshape(1, -1, 1, 1)
    return jnp.maximum(out, 0.0)


if __name__ == "__main__":
    key = jax.random.PRNGKey(0)
    kx, kwt, kb, kg, kbe = jax.random.split(key, 5)

    N, Cin, Cout, H, W = 2, 4, 8, 16, 16
    x = jax.random.normal(kx, (N, Cin, H, W), jnp.float32)

    fan_in = Cin * 3 * 3
    bound = 1.0 / float(np.sqrt(fan_in))
    weight = jax.random.uniform(kwt, (Cout, Cin, 3, 3), jnp.float32, -bound, bound)
    bias = jax.random.uniform(kb, (Cout,), jnp.float32, -bound, bound)
    gamma = 1.0 + 0.1 * jax.random.normal(kg, (Cout,), jnp.float32)
    beta = 0.1 * jax.random.normal(kbe, (Cout,), jnp.float32)

    ref = _reference(x, weight, bias, gamma, beta)

    # Default tiling: whole image per grid step (grid = N = 2 -> both v7x TCs busy).
    out = jax.block_until_ready(jax.jit(simple_block2d)(x, weight, bias, gamma, beta))
    np.testing.assert_allclose(np.asarray(out), np.asarray(ref), rtol=1e-3, atol=1e-3)

    # Forced row-band tiling (2 bands/image, 4 grid steps) to exercise the halo-slab
    # path and the multi-tile Welford stats merge.
    out_b = jax.block_until_ready(
        jax.jit(functools.partial(simple_block2d, tile_h=8))(x, weight, bias, gamma, beta))
    np.testing.assert_allclose(np.asarray(out_b), np.asarray(ref), rtol=1e-3, atol=1e-3)

    print("KERNEL_OK")
</pallas_src>

<mosaic_0001>
module attributes {stable_mosaic.version = 11 : i64} {
  func.func @_conv_bn_stats_kernel(%arg0: i32, %arg1: memref<1x4x342xf32, #tpu.memory_space<vmem>>, %arg2: memref<9x8x4xf32, #tpu.memory_space<vmem>>, %arg3: memref<1x288xf32, #tpu.memory_space<vmem>>, %arg4: memref<1x8x288xf32, #tpu.memory_space<vmem>>, %arg5: memref<1x8x2xf32, #tpu.memory_space<vmem>>) attributes {dimension_semantics = [#tpu.dimension_semantics<parallel>], iteration_bounds = array<i64: 2>, scalar_prefetch = 0 : i64, scratch_operands = 0 : i64, tpu.core_type = #tpu.core_type<tc>, window_params = [{transform_indices = @transform_0, window_bounds = array<i64: 1, 4, 342>}, {pipeline_mode = #tpu.pipeline_mode<synchronous>, transform_indices = @transform_1, window_bounds = array<i64: 9, 8, 4>}, {pipeline_mode = #tpu.pipeline_mode<synchronous>, transform_indices = @transform_2, window_bounds = array<i64: 1, 288>}, {transform_indices = @transform_3, window_bounds = array<i64: 1, 8, 288>}, {transform_indices = @transform_4, window_bounds = array<i64: 1, 8, 2>}]} {
    %c0 = arith.constant 0 : index
    %c0_0 = arith.constant 0 : index
    %c0_1 = arith.constant 0 : index
    %0 = vector.load %arg1[%c0, %c0_0, %c0_1] : memref<1x4x342xf32, #tpu.memory_space<vmem>>, vector<1x4x342xf32>
    %1 = vector.shape_cast %0 : vector<1x4x342xf32> to vector<4x342xf32>
    %c0_2 = arith.constant 0 : index
    %c0_3 = arith.constant 0 : index
    %c0_4 = arith.constant 0 : index
    %2 = vector.load %arg2[%c0_2, %c0_3, %c0_4] : memref<9x8x4xf32, #tpu.memory_space<vmem>>, vector<1x8x4xf32>
    %3 = vector.shape_cast %2 : vector<1x8x4xf32> to vector<8x4xf32>
    %4 = vector.extract_strided_slice %1 {offsets = [0, 0], sizes = [4, 288], strides = [1, 1]} : vector<4x342xf32> to vector<4x288xf32>
    %cst = arith.constant dense<0.000000e+00> : vector<8x288xf32>
    %5 = tpu.matmul %3, %4, %cst {dimension_numbers = #tpu.dot_dimension_numbers<[1], [0], [0], [1], [0, 0, 1, 1], [], []>} : vector<8x4xf32>, vector<4x288xf32>, vector<8x288xf32> -> vector<8x288xf32>
    %c1 = arith.constant 1 : index
    %c0_5 = arith.constant 0 : index
    %c0_6 = arith.constant 0 : index
    %6 = vector.load %arg2[%c1, %c0_5, %c0_6] : memref<9x8x4xf32, #tpu.memory_space<vmem>>, vector<1x8x4xf32>
    %7 = vector.shape_cast %6 : vector<1x8x4xf32> to vector<8x4xf32>
    %8 = vector.extract_strided_slice %1 {offsets = [0, 1], sizes = [4, 288], strides = [1, 1]} : vector<4x342xf32> to vector<4x288xf32>
    %cst_7 = arith.constant dense<0.000000e+00> : vector<8x288xf32>
    %9 = tpu.matmul %7, %8, %cst_7 {dimension_numbers = #tpu.dot_dimension_numbers<[1], [0], [0], [1], [0, 0, 1, 1], [], []>} : vector<8x4xf32>, vector<4x288xf32>, vector<8x288xf32> -> vector<8x288xf32>
    %10 = arith.addf %5, %9 : vector<8x288xf32>
    %c2 = arith.constant 2 : index
    %c0_8 = arith.constant 0 : index
    %c0_9 = arith.constant 0 : index
    %11 = vector.load %arg2[%c2, %c0_8, %c0_9] : memref<9x8x4xf32, #tpu.memory_space<vmem>>, vector<1x8x4xf32>
    %12 = vector.shape_cast %11 : vector<1x8x4xf32> to vector<8x4xf32>
    %13 = vector.extract_strided_slice %1 {offsets = [0, 2], sizes = [4, 288], strides = [1, 1]} : vector<4x342xf32> to vector<4x288xf32>
    %cst_10 = arith.constant dense<0.000000e+00> : vector<8x288xf32>
    %14 = tpu.matmul %12, %13, %cst_10 {dimension_numbers = #tpu.dot_dimension_numbers<[1], [0], [0], [1], [0, 0, 1, 1], [], []>} : vector<8x4xf32>, vector<4x288xf32>, vector<8x288xf32> -> vector<8x288xf32>
    %15 = arith.addf %10, %14 : vector<8x288xf32>
    %c3 = arith.constant 3 : index
    %c0_11 = arith.constant 0 : index
    %c0_12 = arith.constant 0 : index
    %16 = vector.load %arg2[%c3, %c0_11, %c0_12] : memref<9x8x4xf32, #tpu.memory_space<vmem>>, vector<1x8x4xf32>
    %17 = vector.shape_cast %16 : vector<1x8x4xf32> to vector<8x4xf32>
    %18 = vector.extract_strided_slice %1 {offsets = [0, 18], sizes = [4, 288], strides = [1, 1]} : vector<4x342xf32> to vector<4x288xf32>
    %cst_13 = arith.constant dense<0.000000e+00> : vector<8x288xf32>
    %19 = tpu.matmul %17, %18, %cst_13 {dimension_numbers = #tpu.dot_dimension_numbers<[1], [0], [0], [1], [0, 0, 1, 1], [], []>} : vector<8x4xf32>, vector<4x288xf32>, vector<8x288xf32> -> vector<8x288xf32>
    %20 = arith.addf %15, %19 : vector<8x288xf32>
    %c4 = arith.constant 4 : index
    %c0_14 = arith.constant 0 : index
    %c0_15 = arith.constant 0 : index
    %21 = vector.load %arg2[%c4, %c0_14, %c0_15] : memref<9x8x4xf32, #tpu.memory_space<vmem>>, vector<1x8x4xf32>
    %22 = vector.shape_cast %21 : vector<1x8x4xf32> to vector<8x4xf32>
    %23 = vector.extract_strided_slice %1 {offsets = [0, 19], sizes = [4, 288], strides = [1, 1]} : vector<4x342xf32> to vector<4x288xf32>
    %cst_16 = arith.constant dense<0.000000e+00> : vector<8x288xf32>
    %24 = tpu.matmul %22, %23, %cst_16 {dimension_numbers = #tpu.dot_dimension_numbers<[1], [0], [0], [1], [0, 0, 1, 1], [], []>} : vector<8x4xf32>, vector<4x288xf32>, vector<8x288xf32> -> vector<8x288xf32>
    %25 = arith.addf %20, %24 : vector<8x288xf32>
    %c5 = arith.constant 5 : index
    %c0_17 = arith.constant 0 : index
    %c0_18 = arith.constant 0 : index
    %26 = vector.load %arg2[%c5, %c0_17, %c0_18] : memref<9x8x4xf32, #tpu.memory_space<vmem>>, vector<1x8x4xf32>
    %27 = vector.shape_cast %26 : vector<1x8x4xf32> to vector<8x4xf32>
    %28 = vector.extract_strided_slice %1 {offsets = [0, 20], sizes = [4, 288], strides = [1, 1]} : vector<4x342xf32> to vector<4x288xf32>
    %cst_19 = arith.constant dense<0.000000e+00> : vector<8x288xf32>
    %29 = tpu.matmul %27, %28, %cst_19 {dimension_numbers = #tpu.dot_dimension_numbers<[1], [0], [0], [1], [0, 0, 1, 1], [], []>} : vector<8x4xf32>, vector<4x288xf32>, vector<8x288xf32> -> vector<8x288xf32>
    %30 = arith.addf %25, %29 : vector<8x288xf32>
    %c6 = arith.constant 6 : index
    %c0_20 = arith.constant 0 : index
    %c0_21 = arith.constant 0 : index
    %31 = vector.load %arg2[%c6, %c0_20, %c0_21] : memref<9x8x4xf32, #tpu.memory_space<vmem>>, vector<1x8x4xf32>
    %32 = vector.shape_cast %31 : vector<1x8x4xf32> to vector<8x4xf32>
    %33 = vector.extract_strided_slice %1 {offsets = [0, 36], sizes = [4, 288], strides = [1, 1]} : vector<4x342xf32> to vector<4x288xf32>
    %cst_22 = arith.constant dense<0.000000e+00> : vector<8x288xf32>
    %34 = tpu.matmul %32, %33, %cst_22 {dimension_numbers = #tpu.dot_dimension_numbers<[1], [0], [0], [1], [0, 0, 1, 1], [], []>} : vector<8x4xf32>, vector<4x288xf32>, vector<8x288xf32> -> vector<8x288xf32>
    %35 = arith.addf %30, %34 : vector<8x288xf32>
    %c7 = arith.constant 7 : index
    %c0_23 = arith.constant 0 : index
    %c0_24 = arith.constant 0 : index
    %36 = vector.load %arg2[%c7, %c0_23, %c0_24] : memref<9x8x4xf32, #tpu.memory_space<vmem>>, vector<1x8x4xf32>
    %37 = vector.shape_cast %36 : vector<1x8x4xf32> to vector<8x4xf32>
    %38 = vector.extract_strided_slice %1 {offsets = [0, 37], sizes = [4, 288], strides = [1, 1]} : vector<4x342xf32> to vector<4x288xf32>
    %cst_25 = arith.constant dense<0.000000e+00> : vector<8x288xf32>
    %39 = tpu.matmul %37, %38, %cst_25 {dimension_numbers = #tpu.dot_dimension_numbers<[1], [0], [0], [1], [0, 0, 1, 1], [], []>} : vector<8x4xf32>, vector<4x288xf32>, vector<8x288xf32> -> vector<8x288xf32>
    %40 = arith.addf %35, %39 : vector<8x288xf32>
    %c8 = arith.constant 8 : index
    %c0_26 = arith.constant 0 : index
    %c0_27 = arith.constant 0 : index
    %41 = vector.load %arg2[%c8, %c0_26, %c0_27] : memref<9x8x4xf32, #tpu.memory_space<vmem>>, vector<1x8x4xf32>
    %42 = vector.shape_cast %41 : vector<1x8x4xf32> to vector<8x4xf32>
    %43 = vector.extract_strided_slice %1 {offsets = [0, 38], sizes = [4, 288], strides = [1, 1]} : vector<4x342xf32> to vector<4x288xf32>
    %cst_28 = arith.constant dense<0.000000e+00> : vector<8x288xf32>
    %44 = tpu.matmul %42, %43, %cst_28 {dimension_numbers = #tpu.dot_dimension_numbers<[1], [0], [0], [1], [0, 0, 1, 1], [], []>} : vector<8x4xf32>, vector<4x288xf32>, vector<8x288xf32> -> vector<8x288xf32>
    %45 = arith.addf %40, %44 : vector<8x288xf32>
    %c0_29 = arith.constant 0 : index
    %c0_30 = arith.constant 0 : index
    %c0_31 = arith.constant 0 : index
    %46 = vector.load %arg4[%c0_29, %c0_30, %c0_31] : memref<1x8x288xf32, #tpu.memory_space<vmem>>, vector<1x8x288xf32>
    %47 = vector.shape_cast %46 : vector<1x8x288xf32> to vector<8x288xf32>
    %48 = vector.shape_cast %45 : vector<8x288xf32> to vector<1x8x288xf32>
    tpu.vector_store %arg4[%c0_29, %c0_30, %c0_31], %48 {strides = array<i32>} : memref<1x8x288xf32, #tpu.memory_space<vmem>>, vector<1x8x288xf32>,
    %c0_32 = arith.constant 0 : index
    %c0_33 = arith.constant 0 : index
    %49 = vector.load %arg3[%c0_32, %c0_33] : memref<1x288xf32, #tpu.memory_space<vmem>>, vector<1x288xf32>
    %50 = vector.broadcast %49 : vector<1x288xf32> to vector<8x288xf32>
    %51 = arith.mulf %45, %50 : vector<8x288xf32>
    %cst_34 = arith.constant dense<0.000000e+00> : vector<8xf32>
    %52 = vector.multi_reduction <add>, %51, %cst_34 [1] : vector<8x288xf32> to vector<8xf32>
    %53 = vector.shape_cast %52 : vector<8xf32> to vector<8x1xf32>
    %cst_35 = arith.constant 3.906250e-03 : f32
    %54 = vector.broadcast %cst_35 : f32 to vector<8x1xf32>
    %55 = arith.mulf %53, %54 : vector<8x1xf32>
    %56 = vector.broadcast %55 : vector<8x1xf32> to vector<8x288xf32>
    %57 = arith.subf %45, %56 : vector<8x288xf32>
    %58 = vector.broadcast %49 : vector<1x288xf32> to vector<8x288xf32>
    %59 = arith.mulf %57, %58 : vector<8x288xf32>
    %60 = arith.mulf %59, %59 : vector<8x288xf32>
    %cst_36 = arith.constant dense<0.000000e+00> : vector<8xf32>
    %61 = vector.multi_reduction <add>, %60, %cst_36 [1] : vector<8x288xf32> to vector<8xf32>
    %62 = vector.shape_cast %61 : vector<8xf32> to vector<8x1xf32>
    %c0_37 = arith.constant 0 : index
    %c0_38 = arith.constant 0 : index
    %c0_39 = arith.constant 0 : index
    %63 = vector.load %arg5[%c0_37, %c0_38, %c0_39] : memref<1x8x2xf32, #tpu.memory_space<vmem>>, vector<1x8x1xf32>
    %64 = vector.shape_cast %63 : vector<1x8x1xf32> to vector<8x1xf32>
    %65 = vector.shape_cast %53 : vector<8x1xf32> to vector<1x8x1xf32>
    tpu.vector_store %arg5[%c0_37, %c0_38, %c0_39], %65 {strides = array<i32>} : memref<1x8x2xf32, #tpu.memory_space<vmem>>, vector<1x8x1xf32>,
    %c0_40 = arith.constant 0 : index
    %c0_41 = arith.constant 0 : index
    %c1_42 = arith.constant 1 : index
    %66 = vector.load %arg5[%c0_40, %c0_41, %c1_42] : memref<1x8x2xf32, #tpu.memory_space<vmem>>, vector<1x8x1xf32>
    %67 = vector.shape_cast %66 : vector<1x8x1xf32> to vector<8x1xf32>
    %68 = vector.shape_cast %62 : vector<8x1xf32> to vector<1x8x1xf32>
    tpu.vector_store %arg5[%c0_40, %c0_41, %c1_42], %68 {strides = array<i32>} : memref<1x8x2xf32, #tpu.memory_space<vmem>>, vector<1x8x1xf32>,
    return
  }
  func.func @transform_0(%arg0: i32) -> (i32, i32, i32) {
    %c0_i32 = arith.constant 0 : i32
    %c0_i32_0 = arith.constant 0 : i32
    %c0_i32_1 = arith.constant 0 : i32
    return %arg0, %c0_i32, %c0_i32_0 : i32, i32, i32
  }
  func.func @transform_1(%arg0: i32) -> (i32, i32, i32) {
    %c0_i32 = arith.constant 0 : i32
    %c0_i32_0 = arith.constant 0 : i32
    %c0_i32_1 = arith.constant 0 : i32
    %c0_i32_2 = arith.constant 0 : i32
    return %c0_i32, %c0_i32_0, %c0_i32_1 : i32, i32, i32
  }
  func.func @transform_2(%arg0: i32) -> (i32, i32) {
    %c0_i32 = arith.constant 0 : i32
    %c0_i32_0 = arith.constant 0 : i32
    %c0_i32_1 = arith.constant 0 : i32
    return %c0_i32, %c0_i32_0 : i32, i32
  }
  func.func @transform_3(%arg0: i32) -> (i32, i32, i32) {
    %c0_i32 = arith.constant 0 : i32
    %c0_i32_0 = arith.constant 0 : i32
    %c0_i32_1 = arith.constant 0 : i32
    return %arg0, %c0_i32, %c0_i32_0 : i32, i32, i32
  }
  func.func @transform_4(%arg0: i32) -> (i32, i32, i32) {
    %c0_i32 = arith.constant 0 : i32
    %c0_i32_0 = arith.constant 0 : i32
    %c0_i32_1 = arith.constant 0 : i32
    return %arg0, %c0_i32, %c0_i32_0 : i32, i32, i32
  }
}

</mosaic_0001>

<bundles_post_ra>
// kernel: simple_block2d.1
= control target key start
LH: loop header
LB: loop body
LE: loop exit
PB: predicated region body
PF: predicated region fallthrough
CT: control target
= control target key end

     0   :  { %s1256_s15 = smov 0   ;;  %s1392_s0 = inlined_call_operand.vmem [shape: f32[2,4,342], index: 0, kind: input, shape index: {}]   ;;  %s1393_s1 = inlined_call_operand.vmem [shape: f32[9,8,4], index: 1, kind: input, shape index: {}]   ;;  %s1394_s2 = inlined_call_operand.vmem [shape: f32[1,288], index: 2, kind: input, shape index: {}]   ;;  %s1395_s3 = inlined_call_operand.vmem [shape: f32[2,8,288], index: 3, kind: output, shape index: {0}]   ;;  %s1396_s4 = inlined_call_operand.vmem [shape: f32[2,8,2], index: 4, kind: output, shape index: {1}]  }
   0x1 LB: > { %s1125_s16 = sadd.s32 4294967295, %s1221_s15   ;;  %p1129_p0 = scmp.ge.s32.totalorder %s1221_s15, 1  ;;  %s1221_s15 = sphi %s1256_s15, %s15_s15  }
   0x2   : > { %p165_p1 = scmp.lt.s32.totalorder %s1221_s15, 3 }
   0x4   : > { %p166_p2 = pnand %p1129_p0, %p165_p1 }
   0x5   : > { %p195_p3 = scmp.lt.s32.totalorder (!%p166_p2), %s1125_s16, 1  ;;  %s1223_s21 = smov (!%p166_p2), 127  }
   0x6   : > { %169 = sbr.rel (%p166_p2) target bundleno = 592 (0x250), region = 32  ;;  %s1224_s22 = smov (!%p166_p2), 126  }
   0x7   : > { %s1225_s23 = smov (!%p166_p2), 110   ;;  %s1226_s24 = smov (!%p166_p2), 109  }
   0x8   : > { %s1227_s25 = smov (!%p166_p2), 108   ;;  %s1228_s26 = smov (!%p166_p2), 92  }
   0x9   : > { %s1229_s27 = smov (!%p166_p2), 91   ;;  %s1230_s28 = smov (!%p166_p2), 90  }
   0xb   : > { %s1398_s16 = smov (!%p195_p3, %s1125_s16), 1  ;;  %vm235_vm0 = vcmask 1043456   ;;  %vm231_vm1 = vcmask 31744   ;;  %v211_v29 = vld [vmem:[%s1393_s1] sm:$0xff]  ;;  %vm228_vm2 = vcmask 1039360   ;;  %v1133_v31 = vld [vmem:[%s1393_s1 + $0x8] sm:$0xff] }
   0xc   : > { %s1197_s17 = smul.u32 12, %s1398_s16  ;;  %vm391_vm3 = vcmask 1031168   ;;  %v1146_v36 = vld [vmem:[%s1393_s1 + $0x10] sm:$0xff]  ;;  %vm480_vm4 = vcmask 900096   ;;  %v1153_v46 = vld [vmem:[%s1393_s1 + $0x18] sm:$0xff]  ;;  %vm569_vm5 = vcmask 891904  }
   0xd   : > { %v1160_v52 = vld [vmem:[%s1393_s1 + $0x20] sm:$0xff]  ;;  %vm658_vm6 = vcmask 883712   ;;  %v1167_v57 = vld [vmem:[%s1393_s1 + $0x28] sm:$0xff]  ;;  %vm747_vm7 = vcmask 752640   ;;  %vm836_vm8 = vcmask 744448   ;;  %vm925_vm9 = vcmask 736256  }
   0xe   : > { %s199_s20 = scalar_lea.vmem %s1392_s0, %s1197_s17  ;;  %vm1002_vm10 = vcmask 261120   ;;  %s1132_s29 = sshll.u32 %s1398_s16, 3  ;;  %vm1035_vm11 = vcmask 7168   ;;  %vm1037_vm12 = vcmask 15368  }
   0xf   : > { %v210_v0 = vld [vmem:[%s199_s20 + $0x8] sm:$0xf]  ;;  %v1270_v1 = vld [vmem:[%s199_s20] sm:$0xff]  ;;  %s208_s6 = scalar_lea.vmem %s1396_s4, %s1132_s29 }
  0x10   : > { %218 = vst [vmem:[#allocation1 + $0x10] ss:$2 sm:$0xff] %v210_v0 }
  0x11   : > { %216 = vst [vmem:[#allocation1] ss:$2 sm:$0xff] %v1270_v1 }
  0x17   : > { %v221_v2 = vld.sshfl [vmem:[#allocation1 + $0x10] sm:$0xff pattern:$0x75316420] }
  0x18   : > { %226 = vrot.lane.b32.xlu0 %v221_v2, %s1223_s21  ;;  %304 = vst [vmem:[#allocation1 + $0x10] ss:$2 sm:$0xff] %v210_v0  ;;  %v220_v3 = vld.sshfl [vmem:[#allocation1 + $0x8] sm:$0xff pattern:$0x75316420] }
  0x19   : > { %224 = vrot.lane.b32.xlu1 %v220_v3, %s1223_s21  ;;  %v219_v4 = vld.sshfl [vmem:[#allocation1] sm:$0xff pattern:$0x75316420] }
  0x1a   : > { %302 = vst [vmem:[#allocation1] ss:$2 sm:$0xff] %v1270_v1 }
  0x1f   : > { %v1274_v5 = vld.sshfl [vmem:[#allocation1 + $0x10] sm:$0xff pattern:$0x75316420] }
  0x20   : > { %222 = vrot.lane.b32.xlu0 %v219_v4, %s1223_s21  ;;  %381 = vst [vmem:[#allocation1 + $0x10] ss:$2 sm:$0xff] %v210_v0 }
  0x21   : > { %v1276_v6 = vld.sshfl [vmem:[#allocation1] sm:$0xff pattern:$0x75316420]  ;;  %v1278_v7 = vld.sshfl [vmem:[#allocation1 + $0x8] sm:$0xff pattern:$0x75316420] }
  0x22   : > { %379 = vst [vmem:[#allocation1] ss:$2 sm:$0xff] %v1270_v1  ;;  %1140 = vmatpush.msk.msra.mxu3 %vm235_vm0, %v1276_v6 }
  0x23   : > { %1141 = vmatmul.msk.f32.vlgmr.msra.gmra.mxu3 %vm231_vm1, %v211_v29 }
  0x27   : > { %v384_v8 = vld.sshfl [vmem:[#allocation1 + $0x10] sm:$0xff pattern:$0x75316420] }
  0x28   : > { %470 = vst [vmem:[#allocation1 + $0x10] ss:$2 sm:$0xff] %v210_v0 }
  0x29   : > { %v382_v9 = vld.sshfl [vmem:[#allocation1] sm:$0xff pattern:$0x75316420]  ;;  %v383_v10 = vld.sshfl [vmem:[#allocation1 + $0x8] sm:$0xff pattern:$0x75316420] }
  0x2a   : > { %385 = vrot.lane.b32.xlu1 %v382_v9, %s1224_s22  ;;  %468 = vst [vmem:[#allocation1] ss:$2 sm:$0xff] %v1270_v1  ;;  %387 = vrot.lane.b32.xlu2 %v383_v10, %s1224_s22 }
  0x2f   : > { %v473_v11 = vld.sshfl [vmem:[#allocation1 + $0x10] sm:$0xff pattern:$0x75316420] }
  0x30   : > { %559 = vst [vmem:[#allocation1 + $0x10] ss:$2 sm:$0xff] %v210_v0 }
  0x31   : > { %v472_v12 = vld.sshfl [vmem:[#allocation1 + $0x8] sm:$0xff pattern:$0x75316420]  ;;  %v471_v13 = vld.sshfl [vmem:[#allocation1] sm:$0xff pattern:$0x75316420] }
  0x32   : > { %478 = vrot.lane.b32.xlu1 %v473_v11, %s1225_s23  ;;  %476 = vrot.lane.b32.xlu0 %v472_v12, %s1225_s23  ;;  %557 = vst [vmem:[#allocation1] ss:$2 sm:$0xff] %v1270_v1  ;;  %v1188_v11 = vld [vmem:[%s1393_s1 + $0x40] sm:$0xff] }
  0x33   : > { %389 = vrot.lane.b32.xlu2 %v384_v8, %s1224_s22 }
  0x37   : > { %v562_v14 = vld.sshfl [vmem:[#allocation1 + $0x10] sm:$0xff pattern:$0x75316420] }
  0x38   : > { %648 = vst [vmem:[#allocation1 + $0x10] ss:$2 sm:$0xff] %v210_v0 }
  0x39   : > { %v561_v15 = vld.sshfl [vmem:[#allocation1 + $0x8] sm:$0xff pattern:$0x75316420]  ;;  %v560_v16 = vld.sshfl [vmem:[#allocation1] sm:$0xff pattern:$0x75316420] }
  0x3a   : > { %567 = vrot.lane.b32.xlu0 %v562_v14, %s1226_s24  ;;  %563 = vrot.lane.b32.xlu1 %v560_v16, %s1226_s24  ;;  %646 = vst [vmem:[#allocation1] ss:$2 sm:$0xff] %v1270_v1 }
  0x3b   : > { %474 = vrot.lane.b32.xlu2 %v471_v13, %s1225_s23  ;;  %s1198_s23 = smul.u32 24, %s1398_s16 }
  0x3f   : > { %v651_v17 = vld.sshfl [vmem:[#allocation1 + $0x10] sm:$0xff pattern:$0x75316420] }
  0x40   : > { %737 = vst [vmem:[#allocation1 + $0x10] ss:$2 sm:$0xff] %v210_v0 }
  0x41   : > { %v650_v18 = vld.sshfl [vmem:[#allocation1 + $0x8] sm:$0xff pattern:$0x75316420]  ;;  %v649_v19 = vld.sshfl [vmem:[#allocation1] sm:$0xff pattern:$0x75316420] }
  0x42   : > { %654 = vrot.lane.b32.xlu1 %v650_v18, %s1227_s25  ;;  %652 = vrot.lane.b32.xlu0 %v649_v19, %s1227_s25  ;;  %735 = vst [vmem:[#allocation1] ss:$2 sm:$0xff] %v1270_v1 }
  0x43   : > { %565 = vrot.lane.b32.xlu2 %v561_v15, %s1226_s24 }
  0x47   : > { %v740_v20 = vld.sshfl [vmem:[#allocation1 + $0x10] sm:$0xff pattern:$0x75316420] }
  0x48   : > { %826 = vst [vmem:[#allocation1 + $0x10] ss:$2 sm:$0xff] %v210_v0 }
  0x49   : > { %v739_v21 = vld.sshfl [vmem:[#allocation1 + $0x8] sm:$0xff pattern:$0x75316420]  ;;  %v738_v22 = vld.sshfl [vmem:[#allocation1] sm:$0xff pattern:$0x75316420] }
  0x4a   : > { %656 = vrot.lane.b32.xlu1 %v651_v17, %s1227_s25  ;;  %743 = vrot.lane.b32.xlu0 %v739_v21, %s1228_s26  ;;  %824 = vst [vmem:[#allocation1] ss:$2 sm:$0xff] %v1270_v1 }
  0x4b   : > { %741 = vrot.lane.b32.xlu2 %v738_v22, %s1228_s26 }
  0x4f   : > { %v829_v23 = vld.sshfl [vmem:[#allocation1 + $0x10] sm:$0xff pattern:$0x75316420] }
  0x50   : > { %915 = vst [vmem:[#allocation1 + $0x10] ss:$2 sm:$0xff] %v210_v0 }
  0x51   : > { %v828_v24 = vld.sshfl [vmem:[#allocation1 + $0x8] sm:$0xff pattern:$0x75316420]  ;;  %v827_v25 = vld.sshfl [vmem:[#allocation1] sm:$0xff pattern:$0x75316420] }
  0x52   : > { %834 = vrot.lane.b32.xlu1 %v829_v23, %s1229_s27  ;;  %832 = vrot.lane.b32.xlu0 %v828_v24, %s1229_s27  ;;  %913 = vst [vmem:[#allocation1] ss:$2 sm:$0xff] %v1270_v1  ;;  %v1174_v1 = vld [vmem:[%s1393_s1 + $0x30] sm:$0xff] }
  0x53   : > { %745 = vrot.lane.b32.xlu2 %v740_v20, %s1228_s26 }
  0x57   : > { %v918_v26 = vld.sshfl [vmem:[#allocation1 + $0x10] sm:$0xff pattern:$0x75316420] }
  0x59   : > { %v916_v27 = vld.sshfl [vmem:[#allocation1] sm:$0xff pattern:$0x75316420]  ;;  %v917_v28 = vld.sshfl [vmem:[#allocation1 + $0x8] sm:$0xff pattern:$0x75316420] }
  0x5a   : > { %923 = vrot.lane.b32.xlu0 %v918_v26, %s1230_s28  ;;  %919 = vrot.lane.b32.xlu1 %v916_v27, %s1230_s28 }
  0x5b   : > { %830 = vrot.lane.b32.xlu2 %v827_v25, %s1229_s27 }
  0x63   : > { %921 = vrot.lane.b32.xlu2 %v917_v28, %s1230_s28  ;;  %s204_s28 = scalar_lea.vmem %s1395_s3, %s1198_s23 }
  0x84   : > { %v388_v30 = vpop.permute.xlu2 %387 }
  0x8a   : > { %v227_v32 = vpop.permute.xlu0 %226 }
  0x8b   : > { %v225_v33 = vpop.permute.xlu1 %224  ;;  %1138 = vmatpush.msk.msra.mxu2 %vm235_vm0, %v227_v32 }
  0x8c   : > { %v230_v34 = vsel %vm228_vm2, %v225_v33, %v227_v32  ;;  %1139 = vmatmul.msk.f32.vlgmr.msra.gmra.mxu2 %vm231_vm1, %v1133_v31 }
  0x8d   : > { %1136 = vmatpush.msk.msra.mxu1 %vm235_vm0, %v230_v34  ;;  %v390_v35 = vpop.permute.xlu2 %389 }
  0x8e   : > { %1137 = vmatmul.msk.f32.vlgmr.msra.gmra.mxu1 %vm231_vm1, %v1133_v31  ;;  %v393_v37 = vsel %vm391_vm3, %v388_v30, %v390_v35 }
  0x8f   : > { %1149 = vmatpush.msk.msrb.mxu3 %vm235_vm0, %v393_v37  ;;  %1144 = vmatpush.msk.msrb.mxu1 %vm235_vm0, %v1274_v5  ;;  %v1181_v5 = vld [vmem:[%s1393_s1 + $0x38] sm:$0xff] }
  0x90   : > { %1150 = vmatmul.msk.f32.vlgmr.msrb.gmra.mxu3 %vm231_vm1, %v1146_v36 }
  0x92   : > { %v223_v38 = vpop.permute.xlu0 %222 }
  0x93   : > { %v229_v39 = vsel %vm228_vm2, %v223_v38, %v225_v33 }
  0x94   : > { %1134 = vmatpush.msk.msra.mxu0 %vm235_vm0, %v229_v39 }
  0x95   : > { %1135 = vmatmul.msk.f32.vlgmr.msra.gmra.mxu0 %vm231_vm1, %v1133_v31  ;;  %v475_v40 = vpop.permute.xlu2 %474 }
  0x96   : > { %1142 = vmatpush.msk.msrb.mxu0 %vm235_vm0, %v1278_v7  ;;  %1145 = vmatmul.msk.f32.vlgmr.msrb.gmra.mxu1 %vm231_vm1, %v211_v29 }
  0x98   : > { %1151 = vmatpush.msk.msra.mxu0 %vm235_vm0, %v390_v35 }
  0x9c   : > { %v386_v41 = vpop.permute.xlu1 %385 }
  0x9d   : > { %v392_v42 = vsel %vm391_vm3, %v386_v41, %v388_v30  ;;  %1143 = vmatmul.msk.f32.vlgmr.msrb.gmra.mxu0 %vm231_vm1, %v211_v29  ;;  %v566_v43 = vpop.permute.xlu2 %565 }
  0x9e   : > { %1147 = vmatpush.msk.msrb.mxu2 %vm235_vm0, %v392_v42 }
  0x9f   : > { %1148 = vmatmul.msk.f32.vlgmr.msrb.gmra.mxu2 %vm231_vm1, %v1146_v36 }
  0xa4   : > { %v479_v44 = vpop.permute.xlu1 %478  ;;  %v477_v45 = vpop.permute.xlu0 %476 }
  0xa5   : > { %v482_v47 = vsel %vm480_vm4, %v477_v45, %v479_v44  ;;  %v481_v48 = vsel %vm480_vm4, %v475_v40, %v477_v45  ;;  %1158 = vmatpush.msk.msra.mxu3 %vm235_vm0, %v479_v44  ;;  %1152 = vmatmul.msk.f32.vlgmr.msra.gmra.mxu0 %vm231_vm1, %v1146_v36  ;;  %v742_v49 = vpop.permute.xlu2 %741 }
  0xa6   : > { %1154 = vmatpush.msk.msra.mxu1 %vm235_vm0, %v481_v48  ;;  %1156 = vmatpush.msk.msra.mxu2 %vm235_vm0, %v482_v47  ;;  %v334_v17 = vpop.f32.mrf.mxu3 }
  0xa7   : > { %1157 = vmatmul.msk.f32.vlgmr.msra.gmra.mxu2 %vm231_vm1, %v1153_v46  ;;  %1155 = vmatmul.msk.f32.vlgmr.msra.gmra.mxu1 %vm231_vm1, %v1153_v46 }
  0xa8   : > { %1159 = vmatmul.msk.f32.vlgmr.msra.gmra.mxu3 %vm231_vm1, %v1153_v46 }
  0xac   : > { %v568_v50 = vpop.permute.xlu0 %567  ;;  %v564_v51 = vpop.permute.xlu1 %563 }
  0xad   : > { %v571_v53 = vsel %vm569_vm5, %v566_v43, %v568_v50  ;;  %v570_v54 = vsel %vm569_vm5, %v564_v51, %v566_v43  ;;  %1165 = vmatpush.msk.msrb.mxu2 %vm235_vm0, %v568_v50  ;;  %v746_v59 = vpop.permute.xlu2 %745 }
  0xae   : > { %1161 = vmatpush.msk.msrb.mxu0 %vm235_vm0, %v570_v54  ;;  %1163 = vmatpush.msk.msrb.mxu1 %vm235_vm0, %v571_v53 }
  0xaf   : > { %1166 = vmatmul.msk.f32.vlgmr.msrb.gmra.mxu2 %vm231_vm1, %v1160_v52  ;;  %1162 = vmatmul.msk.f32.vlgmr.msrb.gmra.mxu0 %vm231_vm1, %v1160_v52 }
  0xb0   : > { %1164 = vmatmul.msk.f32.vlgmr.msrb.gmra.mxu1 %vm231_vm1, %v1160_v52 }
  0xb4   : > { %v655_v55 = vpop.permute.xlu1 %654  ;;  %v653_v56 = vpop.permute.xlu0 %652 }
  0xb5   : > { %v659_v58 = vsel %vm658_vm6, %v653_v56, %v655_v55  ;;  %v831_v2 = vpop.permute.xlu2 %830 }
  0xb6   : > { %1168 = vmatpush.msk.msrb.mxu3 %vm235_vm0, %v659_v58 }
  0xb7   : > { %1169 = vmatmul.msk.f32.vlgmr.msrb.gmra.mxu3 %vm231_vm1, %v1167_v57 }
  0xbc   : > { %v657_v60 = vpop.permute.xlu1 %656  ;;  %v744_v61 = vpop.permute.xlu0 %743 }
  0xbd   : > { %v660_v62 = vsel %vm658_vm6, %v655_v55, %v657_v60  ;;  %v748_v63 = vsel %vm747_vm7, %v742_v49, %v744_v61  ;;  %v749_v0 = vsel %vm747_vm7, %v744_v61, %v746_v59  ;;  %1172 = vmatpush.msk.msra.mxu1 %vm235_vm0, %v657_v60  ;;  %v922_v8 = vpop.permute.xlu2 %921  ;;  %v1004_v55 = vld [vmem:[%s1394_s2] sm:$0x7] }
  0xbe   : > { %1170 = vmatpush.msk.msra.mxu0 %vm235_vm0, %v660_v62  ;;  %1173 = vmatmul.msk.f32.vlgmr.msra.gmra.mxu1 %vm231_vm1, %v1167_v57  ;;  %v1006_v62 = vperm.slane %v1004_v55, 0 }
  0xbf   : > { %1175 = vmatpush.msk.msra.mxu2 %vm235_vm0, %v748_v63  ;;  %1177 = vmatpush.msk.msra.mxu3 %vm235_vm0, %v749_v0  ;;  %v1007_v63 = vperm.slane %v1004_v55, 1 }
  0xc0   : > { %1171 = vmatmul.msk.f32.vlgmr.msra.gmra.mxu0 %vm231_vm1, %v1167_v57  ;;  %1176 = vmatmul.msk.f32.vlgmr.msra.gmra.mxu2 %vm231_vm1, %v1174_v1 }
  0xc1   : > { %1178 = vmatmul.msk.f32.vlgmr.msra.gmra.mxu3 %vm231_vm1, %v1174_v1  ;;  %1179 = vmatpush.msk.msrb.mxu0 %vm235_vm0, %v746_v59 }
  0xc4   : > { %v835_v3 = vpop.permute.xlu1 %834  ;;  %v833_v4 = vpop.permute.xlu0 %832 }
  0xc5   : > { %v838_v6 = vsel %vm836_vm8, %v833_v4, %v835_v3  ;;  %v837_v7 = vsel %vm836_vm8, %v831_v2, %v833_v4  ;;  %1186 = vmatpush.msk.msrb.mxu3 %vm235_vm0, %v835_v3  ;;  %v1008_v2 = vperm.slane %v1004_v55, 2 }
  0xc6   : > { %1182 = vmatpush.msk.msrb.mxu1 %vm235_vm0, %v837_v7  ;;  %1184 = vmatpush.msk.msrb.mxu2 %vm235_vm0, %v838_v6 }
  0xc7   : > { %1183 = vmatmul.msk.f32.vlgmr.msrb.gmra.mxu1 %vm231_vm1, %v1181_v5 }
  0xc8   : > { %1180 = vmatmul.msk.f32.vlgmr.msrb.gmra.mxu0 %vm231_vm1, %v1174_v1  ;;  %1185 = vmatmul.msk.f32.vlgmr.msrb.gmra.mxu2 %vm231_vm1, %v1181_v5 }
  0xc9   : > { %1187 = vmatmul.msk.f32.vlgmr.msrb.gmra.mxu3 %vm231_vm1, %v1181_v5 }
  0xcc   : > { %v924_v9 = vpop.permute.xlu0 %923  ;;  %v920_v10 = vpop.permute.xlu1 %919 }
  0xcd   : > { %v927_v12 = vsel %vm925_vm9, %v922_v8, %v924_v9  ;;  %v926_v13 = vsel %vm925_vm9, %v920_v10, %v922_v8  ;;  %1193 = vmatpush.msk.msra.mxu2 %vm235_vm0, %v924_v9 }
  0xce   : > { %1189 = vmatpush.msk.msra.mxu0 %vm235_vm0, %v926_v13  ;;  %1191 = vmatpush.msk.msra.mxu1 %vm235_vm0, %v927_v12 }
  0xcf   : > { %1192 = vmatmul.msk.f32.vlgmr.msra.gmra.mxu1 %vm231_vm1, %v1188_v11 }
  0xd0   : > { %1190 = vmatmul.msk.f32.vlgmr.msra.gmra.mxu0 %vm231_vm1, %v1188_v11  ;;  %1194 = vmatmul.msk.f32.vlgmr.msra.gmra.mxu2 %vm231_vm1, %v1188_v11 }
 0x10b   : > { %v279_v14 = vpop.f32.mrf.mxu1 }
 0x10f   : > { %v299_v16 = vpop.f32.mrf.mxu2 }
 0x112   : > { %v259_v15 = vpop.f32.mrf.mxu0 }
 0x113   : > { %v374_v18 = vpop.f32.mrf.mxu1  ;;  %v440_v21 = vpop.f32.mrf.mxu3  ;;  %v335_v28 = vadd.f32 %v334_v17, %v259_v15 }
 0x114   : > { %v375_v39 = vadd.f32 %v374_v18, %v299_v16 }
 0x11a   : > { %v354_v19 = vpop.f32.mrf.mxu0 }
 0x11b   : > { %v355_v32 = vadd.f32 %v354_v19, %v279_v14 }
 0x11d   : > { %v464_v35 = vadd.f32 %v440_v21, %v355_v32 }
 0x122   : > { %v420_v20 = vpop.f32.mrf.mxu2  ;;  %v460_v23 = vpop.f32.mrf.mxu0 }
 0x123   : > { %v463_v34 = vadd.f32 %v420_v20, %v335_v28  ;;  %v465_v46 = vadd.f32 %v460_v23, %v375_v39 }
 0x124   : > { %v509_v22 = vpop.f32.mrf.mxu1 }
 0x125   : > { %v552_v36 = vadd.f32 %v509_v22, %v463_v34 }
 0x12a   : > { %v529_v24 = vpop.f32.mrf.mxu2 }
 0x12b   : > { %v549_v25 = vpop.f32.mrf.mxu3  ;;  %v553_v37 = vadd.f32 %v529_v24, %v464_v35 }
 0x12c   : > { %v598_v27 = vpop.f32.mrf.mxu0  ;;  %v554_v49 = vadd.f32 %v549_v25, %v465_v46 }
 0x12d   : > { %v618_v26 = vpop.f32.mrf.mxu1  ;;  %v641_v40 = vadd.f32 %v598_v27, %v552_v36 }
 0x12e   : > { %v642_v44 = vadd.f32 %v618_v26, %v553_v37 }
 0x132   : > { %v638_v29 = vpop.f32.mrf.mxu2 }
 0x133   : > { %v643_v52 = vadd.f32 %v638_v29, %v554_v49 }
 0x13a   : > { %v687_v30 = vpop.f32.mrf.mxu3 }
 0x13b   : > { %v727_v31 = vpop.f32.mrf.mxu1  ;;  %v730_v45 = vadd.f32 %v687_v30, %v641_v40 }
 0x13c   : > { %v732_v58 = vadd.f32 %v727_v31, %v643_v52 }
 0x13d   : > { %v707_v33 = vpop.f32.mrf.mxu0 }
 0x13e   : > { %v731_v47 = vadd.f32 %v707_v33, %v642_v44 }
 0x143   : > { %v776_v38 = vpop.f32.mrf.mxu2 }
 0x144   : > { %v865_v41 = vpop.f32.mrf.mxu1  ;;  %v796_v42 = vpop.f32.mrf.mxu3  ;;  %v819_v48 = vadd.f32 %v776_v38, %v730_v45 }
 0x145   : > { %v816_v43 = vpop.f32.mrf.mxu0  ;;  %v820_v50 = vadd.f32 %v796_v42, %v731_v47 }
 0x146   : > { %v908_v53 = vadd.f32 %v865_v41, %v819_v48  ;;  %v821_v0 = vadd.f32 %v816_v43, %v732_v58 }
 0x14b   : > { %v885_v51 = vpop.f32.mrf.mxu2 }
 0x14c   : > { %v909_v54 = vadd.f32 %v885_v51, %v820_v50  ;;  %v974_v56 = vpop.f32.mrf.mxu1  ;;  %v905_v61 = vpop.f32.mrf.mxu3 }
 0x14d   : > { %v954_v57 = vpop.f32.mrf.mxu0  ;;  %v910_v1 = vadd.f32 %v905_v61, %v821_v0 }
 0x14e   : > { %v997_v59 = vadd.f32 %v954_v57, %v908_v53  ;;  %v998_v60 = vadd.f32 %v974_v56, %v909_v54 }
 0x150   : > { %1000 = vst [vmem:[%s204_s28] sm:$0xff] %v997_v59  ;;  %v1012_v3 = vmul.f32 %v1006_v62, %v997_v59  ;;  %v1013_v4 = vmul.f32 %v1007_v63, %v998_v60 }
 0x151   : > { %1001 = vst [vmem:[%s204_s28 + $0x8] sm:$0xff] %v998_v60 }
 0x152   : > { %v1015_v8 = vadd.f32 %v1013_v4, %v1012_v3 }
 0x153   : > { %v994_v5 = vpop.f32.mrf.mxu2 }
 0x154   : > { %v999_v6 = vadd.f32 %v994_v5, %v910_v1 }
 0x156   : > { %1003 = vst.msk [vmem:[%s204_s28 + $0x10] sm:$0xff] %vm1002_vm10, %v999_v6  ;;  %v1014_v7 = vmul.f32 %v1008_v2, %v999_v6 }
 0x158   : > { %v1016_v9 = vsel %vm1002_vm10, %v1014_v7, 0.0 }
 0x159   : > { %v1017_v10 = vadd.f32 %v1016_v9, %v1015_v8 }
 0x15b   : > { %1018 = vadd.xlane.f32.xlu0 %v1017_v10 }
 0x1ce   : > { %v1019_v11 = vpop.xlane.xlu0 %1018 }
 0x1cf   : > { %v1020_v12 = vmul.f32 0.00390625, %v1019_v11  ;;  %1036 = vst.msk [vmem:[%s208_s6] sm:$0xff] %vm1035_vm11, %v1019_v11 }
 0x1d1   : > { %v1021_v13 = vsub.f32 %v997_v59, %v1020_v12  ;;  %v1022_v14 = vsub.f32 %v998_v60, %v1020_v12  ;;  %v1023_v15 = vsub.f32 %v999_v6, %v1020_v12 }
 0x1d3   : > { %v1024_v16 = vmul.f32 %v1021_v13, %v1006_v62  ;;  %v1025_v17 = vmul.f32 %v1022_v14, %v1007_v63  ;;  %v1026_v18 = vmul.f32 %v1023_v15, %v1008_v2 }
 0x1d5   : > { %v1027_v19 = vmul.f32 %v1024_v16, %v1024_v16  ;;  %v1028_v20 = vmul.f32 %v1025_v17, %v1025_v17  ;;  %v1029_v21 = vmul.f32 %v1026_v18, %v1026_v18 }
 0x1d7   : > { %v1030_v22 = vadd.f32 %v1028_v20, %v1027_v19  ;;  %v1031_v23 = vsel %vm1002_vm10, %v1029_v21, 0.0 }
 0x1d9   : > { %v1032_v24 = vadd.f32 %v1031_v23, %v1030_v22 }
 0x1db   : > { %1033 = vadd.xlane.f32.xlu1 %v1032_v24 }
 0x24e   : > { %v1034_v25 = vpop.xlane.xlu1 %1033 }
 0x24f   : > { %1038 = vst.msk [vmem:[%s208_s6] sm:$0xff] %vm1037_vm12, %v1034_v25 }
 0x250 PF: > { %s15_s15 = sadd.s32 1, %s1221_s15  }
 0x251   : > { %p12_p4 = scmp.ge.s32.totalorder %s15_s15, 4  }
 0x253   :  { %14 = sbr.rel (!%p12_p4) target bundleno = 1 (0x1), region = 91 }

</bundles_post_ra>
